<compile_context>
chip_gen: v7x
topology: tpu7x:2x2x1
jax: 0.10.0
libtpu: 0.0.40
codegen_flags: <defaults>
</compile_context>

<pallas_src>
import functools
import math

import jax
import jax.numpy as jnp
from jax import lax
from jax.experimental import pallas as pl
from jax.experimental.pallas import tpu as pltpu


# ---------------------------------------------------------------------------
# Generation-aware sizing helpers
# ---------------------------------------------------------------------------

def _vmem_capacity_bytes() -> int:
    """Physical VMEM per TensorCore (128 MiB on v5e/v6e, 64 MiB on v7x)."""
    default = 128 * 1024 * 1024
    try:
        info = pltpu.get_tpu_info()
    except Exception:
        return default
    for attr in ("vmem_capacity_bytes", "vmem_bytes", "vmem_size_bytes"):
        val = getattr(info, attr, None)
        if val:
            return int(val)
    return default


def _vmem_limit_bytes(cap: int) -> int:
    # ~75% of physical with headroom for Mosaic-internal scratch:
    # ~96 MiB on v5e/v6e (128 MiB physical), ~48 MiB on v7x (64 MiB physical).
    return max(32 * 1024 * 1024, min((cap * 3) // 4, 96 * 1024 * 1024))


# ---------------------------------------------------------------------------
# 1) Q/K/V projections, computed once per token, head-major output
# ---------------------------------------------------------------------------

def _proj_heads_kernel(x_ref, w_ref, b_ref, o_ref, *, scale, h, d_k):
    """y = (x @ W + b) * scale, written per head into a (h, S, d_k) layout.

    x_ref: (1, TS, D)   activations (cast to W's dtype for the MXU)
    w_ref: (D, D)       input-major weight (y = x @ W + b), bf16 or f32
    b_ref: (1, D)       bias, f32
    o_ref: (1, h, TS, d_k)
    """
    x = x_ref[0].astype(w_ref.dtype)
    y = jnp.dot(x, w_ref[...], preferred_element_type=jnp.float32) + b_ref[...]
    if scale != 1.0:
        # 1/sqrt(d_k) folded into the Q projection epilogue: one multiply per
        # token instead of one per (query-tile, key-tile) attention step.
        y = y * jnp.float32(scale)
    # Head split done ONCE per token here so the attention inner loop never
    # slices / transposes / concatenates per head.
    for hi in range(h):
        o_ref[0, hi] = y[:, hi * d_k:(hi + 1) * d_k].astype(o_ref.dtype)


def _project_heads(x, w, b, *, scale, h, d_k, out_dtype, seq_tile, vmem_limit):
    B, S, D = x.shape
    ts = S if S <= seq_tile else seq_tile          # seq_tile is a multiple of 8
    n_s = pl.cdiv(S, ts)

    cost = pl.CostEstimate(
        flops=int(2 * B * S * D * D),
        transcendentals=0,
        bytes_accessed=int(B * S * D * (x.dtype.itemsize
                                        + jnp.dtype(out_dtype).itemsize)
                           + D * D * w.dtype.itemsize + D * 4))

    return pl.pallas_call(
        functools.partial(_proj_heads_kernel, scale=scale, h=h, d_k=d_k),
        out_shape=jax.ShapeDtypeStruct((B, h, S, d_k), out_dtype),
        grid=(B, n_s),
        in_specs=[
            pl.BlockSpec((1, ts, D), lambda bi, si: (bi, si, 0)),
            # TODO(synk): pipeline_mode=pl.Buffered(1) on these constant-index
            # weight/bias blocks would drop the redundant second pipeline
            # buffer (VMEM headroom on v7x); omitted here for lowering safety.
            # The attention core below holds no projection weights at all.
            pl.BlockSpec((D, D), lambda bi, si: (0, 0)),
            pl.BlockSpec((1, D), lambda bi, si: (0, 0)),
        ],
        out_specs=pl.BlockSpec((1, h, ts, d_k), lambda bi, si: (bi, 0, si, 0)),
        compiler_params=pltpu.CompilerParams(
            dimension_semantics=("parallel", "parallel"),
            vmem_limit_bytes=vmem_limit),
        cost_estimate=cost,
    )(x, w, b)


# ---------------------------------------------------------------------------
# 2) Flash-style attention core (online softmax over key tiles)
# ---------------------------------------------------------------------------

def _flash_attn_kernel(mask_ref, q_ref, k_ref, v_ref, o_ref, m_s, l_s, acc_s,
                       *, s_k, approx_softmax):
    """One (batch, query-tile, key-tile) step of online-softmax attention.

    mask_ref: (1, TQ, TK) int8, nonzero = attend (broadcast over heads)
    q_ref:    (1, h, TQ, d_k)   pre-projected, pre-scaled queries
    k_ref:    (1, h, TK, d_k)
    v_ref:    (1, h, TK, d_k)
    o_ref:    (1, TQ, h*d_k)    per-head contexts re-interleaved on last k tile
    m_s/l_s:  (h, TQ, 1) f32    running max / normalizer
    acc_s:    (h, TQ, d_k) f32  running weighted-value accumulator
    """
    ki = pl.program_id(2)
    h = q_ref.shape[1]
    d_k = q_ref.shape[3]
    tk = k_ref.shape[2]

    @pl.when(ki == 0)
    def _init():
        m_s[...] = jnp.full_like(m_s, -1e30)
        l_s[...] = jnp.zeros_like(l_s)
        acc_s[...] = jnp.zeros_like(acc_s)

    q = q_ref[0]                       # (h, TQ, d_k)
    k = k_ref[0]                       # (h, TK, d_k)
    v = v_ref[0]                       # (h, TK, d_k)

    # All heads in ONE batched MXU contraction (no per-head slice/.T/concat).
    scores = jnp.einsum('hqd,hkd->hqk', q, k,
                        preferred_element_type=jnp.float32)    # (h, TQ, TK)

    # User mask (int8, nonzero = attend), computed once and broadcast over heads.
    keep = (mask_ref[0] != 0)[None, :, :]
    scores = jnp.where(keep, scores, jnp.float32(-1e9))

    if s_k % tk != 0:
        # Structural mask for the padded tail of the last key tile (cdiv grid).
        # Bias is more negative than the user mask's -1e9 so fully-masked query
        # rows still match the reference exactly (uniform over *real* keys
        # only), and padded V rows are zeroed so garbage never reaches acc.
        kvalid = (ki * tk + lax.broadcasted_iota(jnp.int32, (1, tk), 1)) < s_k
        scores = jnp.where(kvalid[None, :, :], scores, jnp.float32(-1e30))
        v = jnp.where(kvalid[:, :, None], v, jnp.zeros_like(v))

    # Online softmax update, kept in f32.
    m_tile = jnp.max(scores, axis=-1, keepdims=True)           # (h, TQ, 1)
    m_new = jnp.maximum(m_s[...], m_tile)
    alpha = jnp.exp(m_s[...] - m_new)
    p = jnp.exp(scores - m_new)                                # (h, TQ, TK)
    l_s[...] = alpha * l_s[...] + jnp.sum(p, axis=-1, keepdims=True)
    acc_s[...] = alpha * acc_s[...] + jnp.einsum(
        'hqk,hkd->hqd', p.astype(v.dtype), v,
        preferred_element_type=jnp.float32)
    m_s[...] = m_new

    @pl.when(ki == pl.num_programs(2) - 1)
    def _finalize():
        inv_l = pl.reciprocal(l_s[...], approx=approx_softmax)  # EUP when approx
        ctx = acc_s[...] * inv_l                                # (h, TQ, d_k)
        # Re-interleave heads into (TQ, h*d_k) once per query tile.
        for hi in range(h):
            o_ref[0, :, hi * d_k:(hi + 1) * d_k] = ctx[hi].astype(o_ref.dtype)


def _flash_attention(q, k, v, mask_i8, *, q_tile, k_tile, approx_softmax,
                     out_dtype, vmem_limit):
    B, h, Sq, d_k = q.shape
    Sk = k.shape[2]
    D = h * d_k

    tq = Sq if Sq <= q_tile else q_tile            # q_tile: multiple of 8
    tk = Sk if Sk <= k_tile else k_tile            # k_tile: multiple of 128
    n_q = pl.cdiv(Sq, tq)
    n_k = pl.cdiv(Sk, tk)

    cost = pl.CostEstimate(
        flops=int(4 * B * Sq * Sk * D),
        transcendentals=int(B * h * Sq * Sk),
        bytes_accessed=int(B * Sq * Sk                                   # int8 mask
                           + B * Sq * D * (q.dtype.itemsize
                                           + jnp.dtype(out_dtype).itemsize)
                           + 2 * B * Sk * D * k.dtype.itemsize))

    kernel = functools.partial(_flash_attn_kernel, s_k=Sk,
                               approx_softmax=approx_softmax)

    return pl.pallas_call(
        kernel,
        out_shape=jax.ShapeDtypeStruct((B, Sq, D), out_dtype),
        grid=(B, n_q, n_k),
        in_specs=[
            pl.BlockSpec((1, tq, tk), lambda b, qi, ki: (b, qi, ki)),        # mask
            pl.BlockSpec((1, h, tq, d_k), lambda b, qi, ki: (b, 0, qi, 0)),  # q
            pl.BlockSpec((1, h, tk, d_k), lambda b, qi, ki: (b, 0, ki, 0)),  # k
            pl.BlockSpec((1, h, tk, d_k), lambda b, qi, ki: (b, 0, ki, 0)),  # v
        ],
        out_specs=pl.BlockSpec((1, tq, D), lambda b, qi, ki: (b, qi, 0)),
        scratch_shapes=[
            pltpu.VMEM((h, tq, 1), jnp.float32),    # running max
            pltpu.VMEM((h, tq, 1), jnp.float32),    # running normalizer
            pltpu.VMEM((h, tq, d_k), jnp.float32),  # running context
        ],
        compiler_params=pltpu.CompilerParams(
            # Batch and query-tile axes are megacore-parallel (K/V are
            # precomputed, so qi does not need to be "arbitrary"); only the
            # key (reduction) axis is sequential.
            dimension_semantics=("parallel", "parallel", "arbitrary"),
            vmem_limit_bytes=vmem_limit),
        cost_estimate=cost,
    )(mask_i8, q, k, v)


# ---------------------------------------------------------------------------
# 3) Output projection
# ---------------------------------------------------------------------------

def _linear_kernel(x_ref, w_ref, b_ref, o_ref):
    x = x_ref[0].astype(w_ref.dtype)
    y = jnp.dot(x, w_ref[...], preferred_element_type=jnp.float32) + b_ref[...]
    o_ref[0] = y.astype(o_ref.dtype)


def _linear(x, w, b, *, out_dtype, seq_tile, vmem_limit):
    B, S, D = x.shape
    ts = S if S <= seq_tile else seq_tile
    n_s = pl.cdiv(S, ts)
    cost = pl.CostEstimate(
        flops=int(2 * B * S * D * D),
        transcendentals=0,
        bytes_accessed=int(B * S * D * (x.dtype.itemsize
                                        + jnp.dtype(out_dtype).itemsize)
                           + D * D * w.dtype.itemsize + D * 4))
    return pl.pallas_call(
        _linear_kernel,
        out_shape=jax.ShapeDtypeStruct((B, S, D), out_dtype),
        grid=(B, n_s),
        in_specs=[
            pl.BlockSpec((1, ts, D), lambda bi, si: (bi, si, 0)),
            pl.BlockSpec((D, D), lambda bi, si: (0, 0)),
            pl.BlockSpec((1, D), lambda bi, si: (0, 0)),
        ],
        out_specs=pl.BlockSpec((1, ts, D), lambda bi, si: (bi, si, 0)),
        compiler_params=pltpu.CompilerParams(
            dimension_semantics=("parallel", "parallel"),
            vmem_limit_bytes=vmem_limit),
        cost_estimate=cost,
    )(x, w, b)


# ---------------------------------------------------------------------------
# Public wrapper
# ---------------------------------------------------------------------------

def multi_headed_attention(query, key, value, mask, params, *, h,
                           matmul_dtype=jnp.bfloat16, approx_softmax=True,
                           q_tile=None, k_tile=None, seq_tile=None):
    """Forward pass of MultiHeadedAttention (eval mode, dropout = identity).

    query/key/value: (B, S, D) float32
    mask:            (B, S_q, S_k); nonzero = attend, 0 = masked (or None)
    params:          (Wq, bq, Wk, bk, Wv, bv, Wo, bo); W* stored input-major as
                     (D_in, D_out) (transpose of torch Linear.weight), b* (1, D).
    """
    B, Sq, D = query.shape
    Sk = key.shape[1]
    assert D % h == 0
    d_k = D // h
    wq, bq, wk, bk, wv, bv, wo, bo = params

    # Generation-aware tiling / VMEM budget.
    cap = _vmem_capacity_bytes()
    small_vmem = cap <= 64 * 1024 * 1024           # v7x
    if q_tile is None:
        q_tile = 128 if small_vmem else 256        # multiple of 8
    if k_tile is None:
        k_tile = 256 if small_vmem else 512        # multiple of 128 (mask lane dim)
    if seq_tile is None:
        seq_tile = 256 if small_vmem else 512      # multiple of 8
    vmem_limit = _vmem_limit_bytes(cap)

    # Weights in matmul_dtype (bf16 halves weight DMA bytes + VMEM; kernels
    # accumulate in f32); biases stay f32.  In a real model these casts would
    # happen once at parameter-preparation time, not per call.
    wq, wk, wv, wo = (w.astype(matmul_dtype) for w in (wq, wk, wv, wo))
    bq, bk, bv, bo = (b.astype(jnp.float32) for b in (bq, bk, bv, bo))

    # Mask as int8: 4x less HBM traffic / VMEM than f32.  (Ideally the caller
    # already supplies a bool/int8 mask or a per-key (B, S_k) padding mask.)
    if mask is None:
        mask_i8 = jnp.ones((B, Sq, Sk), jnp.int8)
    else:
        mask_i8 = (mask != 0).astype(jnp.int8)

    # 1) Q/K/V projections: computed ONCE per token (never re-done per query
    #    tile), head-major output, 1/sqrt(d_k) folded into the Q projection.
    common = dict(h=h, d_k=d_k, out_dtype=matmul_dtype,
                  seq_tile=seq_tile, vmem_limit=vmem_limit)
    q = _project_heads(query, wq, bq, scale=1.0 / math.sqrt(d_k), **common)
    k = _project_heads(key, wk, bk, scale=1.0, **common)
    v = _project_heads(value, wv, bv, scale=1.0, **common)

    # 2) Flash-style attention core: per-step VMEM is O(TQ*TK + TK*D)
    #    regardless of sequence length (no full (TQ, S) score materialization).
    ctx = _flash_attention(q, k, v, mask_i8, q_tile=q_tile, k_tile=k_tile,
                           approx_softmax=approx_softmax, out_dtype=matmul_dtype,
                           vmem_limit=vmem_limit)

    # 3) Output projection as one full-K (TQ, D) @ (D, D) MXU matmul per tile.
    return _linear(ctx, wo, bo, out_dtype=query.dtype,
                   seq_tile=seq_tile, vmem_limit=vmem_limit)


# ---------------------------------------------------------------------------
# Pure-JAX reference (mirrors the PyTorch forward in eval mode)
# ---------------------------------------------------------------------------

def reference_mha(query, key, value, mask, params, *, h):
    B, Sq, D = query.shape
    d_k = D // h
    wq, bq, wk, bk, wv, bv, wo, bo = params

    def proj(x, w, b):
        y = x @ w + b
        return y.reshape(x.shape[0], x.shape[1], h, d_k).transpose(0, 2, 1, 3)

    q = proj(query, wq, bq)
    k = proj(key, wk, bk)
    v = proj(value, wv, bv)
    scores = jnp.einsum('bhqd,bhkd->bhqk', q, k) / math.sqrt(d_k)
    scores = jnp.where(mask[:, None, :, :] == 0, -1e9, scores)
    p = jax.nn.softmax(scores, axis=-1)
    x = jnp.einsum('bhqk,bhkd->bhqd', p, v)
    x = x.transpose(0, 2, 1, 3).reshape(B, Sq, D)
    return x @ wo + bo


if __name__ == "__main__":
    # --- Test 1: small shapes, exact (f32) and fast (bf16) paths -------------
    B, S, D, H = 2, 8, 32, 4

    key0 = jax.random.PRNGKey(0)
    keys = jax.random.split(key0, 12)
    bound = 1.0 / math.sqrt(D)

    def w_init(k):
        return jax.random.uniform(k, (D, D), jnp.float32, -bound, bound)

    def b_init(k):
        return jax.random.uniform(k, (1, D), jnp.float32, -bound, bound)

    params = (w_init(keys[0]), b_init(keys[1]),   # Wq, bq
              w_init(keys[2]), b_init(keys[3]),   # Wk, bk
              w_init(keys[4]), b_init(keys[5]),   # Wv, bv
              w_init(keys[6]), b_init(keys[7]))   # Wo, bo

    query = jax.random.normal(keys[8], (B, S, D), jnp.float32)
    key_ = jax.random.normal(keys[9], (B, S, D), jnp.float32)
    value = jax.random.normal(keys[10], (B, S, D), jnp.float32)

    # Mask: 1 = attend, 0 = masked (last two key positions of batch 1 masked).
    mask = jnp.ones((B, S, S), jnp.float32)
    mask = mask.at[1, :, S - 2:].set(0.0)

    ref = reference_mha(query, key_, value, mask, params, h=H)

    # Exact path: f32 everywhere, exact softmax reciprocal.
    out_exact = multi_headed_attention(query, key_, value, mask, params, h=H,
                                       matmul_dtype=jnp.float32,
                                       approx_softmax=False)
    out_exact = jax.block_until_ready(out_exact)
    assert jnp.allclose(out_exact, ref, atol=2e-4, rtol=2e-4), (
        f"f32 path max abs err {jnp.max(jnp.abs(out_exact - ref))}")

    # Fast path: bf16 MXU inputs/intermediates + approximate softmax reciprocal.
    out_fast = multi_headed_attention(query, key_, value, mask, params, h=H)
    out_fast = jax.block_until_ready(out_fast)
    assert jnp.allclose(out_fast, ref, atol=1e-1, rtol=1e-1), (
        f"bf16 path max abs err {jnp.max(jnp.abs(out_fast - ref))}")

    # --- Test 2: non-divisible sequence (cdiv grids + masked key/query tails) -
    B2, S2 = 1, 160
    k2 = jax.random.split(jax.random.PRNGKey(1), 4)
    query2 = jax.random.normal(k2[0], (B2, S2, D), jnp.float32)
    key2 = jax.random.normal(k2[1], (B2, S2, D), jnp.float32)
    value2 = jax.random.normal(k2[2], (B2, S2, D), jnp.float32)
    mask2 = jnp.ones((B2, S2, S2), jnp.float32)
    mask2 = mask2.at[:, :, S2 - 5:].set(0.0)     # masked trailing keys
    mask2 = mask2.at[:, 3, :].set(0.0)           # one fully-masked query row

    out2 = multi_headed_attention(query2, key2, value2, mask2, params, h=H,
                                  matmul_dtype=jnp.float32, approx_softmax=False,
                                  q_tile=64, k_tile=128, seq_tile=64)
    out2 = jax.block_until_ready(out2)
    ref2 = reference_mha(query2, key2, value2, mask2, params, h=H)
    assert jnp.allclose(out2, ref2, atol=2e-4, rtol=2e-4), (
        f"tail path max abs err {jnp.max(jnp.abs(out2 - ref2))}")

    print("KERNEL_OK")
</pallas_src>

<mosaic_0001>
module attributes {stable_mosaic.version = 11 : i64} {
  func.func @_proj_heads_kernel(%arg0: i32, %arg1: i32, %arg2: memref<1x8x32xf32, #tpu.memory_space<vmem>>, %arg3: memref<32x32xf32, #tpu.memory_space<vmem>>, %arg4: memref<1x32xf32, #tpu.memory_space<vmem>>, %arg5: memref<1x4x8x8xf32, #tpu.memory_space<vmem>>) attributes {dimension_semantics = [#tpu.dimension_semantics<parallel>, #tpu.dimension_semantics<parallel>], iteration_bounds = array<i64: 2, 1>, scalar_prefetch = 0 : i64, scratch_operands = 0 : i64, tpu.core_type = #tpu.core_type<tc>, window_params = [{transform_indices = @transform_0, window_bounds = array<i64: 1, 8, 32>}, {pipeline_mode = #tpu.pipeline_mode<synchronous>, transform_indices = @transform_1, window_bounds = array<i64: 32, 32>}, {pipeline_mode = #tpu.pipeline_mode<synchronous>, transform_indices = @transform_2, window_bounds = array<i64: 1, 32>}, {transform_indices = @transform_3, window_bounds = array<i64: 1, 4, 8, 8>}]} {
    %c0 = arith.constant 0 : index
    %c0_0 = arith.constant 0 : index
    %c0_1 = arith.constant 0 : index
    %0 = vector.load %arg2[%c0, %c0_0, %c0_1] : memref<1x8x32xf32, #tpu.memory_space<vmem>>, vector<1x8x32xf32>
    %1 = vector.shape_cast %0 : vector<1x8x32xf32> to vector<8x32xf32>
    %c0_2 = arith.constant 0 : index
    %c0_3 = arith.constant 0 : index
    %2 = vector.load %arg3[%c0_2, %c0_3] : memref<32x32xf32, #tpu.memory_space<vmem>>, vector<32x32xf32>
    %cst = arith.constant dense<0.000000e+00> : vector<8x32xf32>
    %3 = tpu.matmul %1, %2, %cst {dimension_numbers = #tpu.dot_dimension_numbers<[1], [0], [0], [1], [0, 0, 1, 1], [], []>} : vector<8x32xf32>, vector<32x32xf32>, vector<8x32xf32> -> vector<8x32xf32>
    %c0_4 = arith.constant 0 : index
    %c0_5 = arith.constant 0 : index
    %4 = vector.load %arg4[%c0_4, %c0_5] : memref<1x32xf32, #tpu.memory_space<vmem>>, vector<1x32xf32>
    %5 = vector.broadcast %4 : vector<1x32xf32> to vector<8x32xf32>
    %6 = arith.addf %3, %5 : vector<8x32xf32>
    %cst_6 = arith.constant 0.353553385 : f32
    %7 = vector.broadcast %cst_6 : f32 to vector<8x32xf32>
    %8 = arith.mulf %6, %7 : vector<8x32xf32>
    %9 = vector.extract_strided_slice %8 {offsets = [0, 0], sizes = [8, 8], strides = [1, 1]} : vector<8x32xf32> to vector<8x8xf32>
    %c0_7 = arith.constant 0 : index
    %c0_8 = arith.constant 0 : index
    %c0_9 = arith.constant 0 : index
    %c0_10 = arith.constant 0 : index
    %10 = vector.load %arg5[%c0_7, %c0_8, %c0_9, %c0_10] : memref<1x4x8x8xf32, #tpu.memory_space<vmem>>, vector<1x1x8x8xf32>
    %11 = vector.shape_cast %10 : vector<1x1x8x8xf32> to vector<8x8xf32>
    %12 = vector.shape_cast %9 : vector<8x8xf32> to vector<1x1x8x8xf32>
    tpu.vector_store %arg5[%c0_7, %c0_8, %c0_9, %c0_10], %12 {strides = array<i32>} : memref<1x4x8x8xf32, #tpu.memory_space<vmem>>, vector<1x1x8x8xf32>,
    %13 = vector.extract_strided_slice %8 {offsets = [0, 8], sizes = [8, 8], strides = [1, 1]} : vector<8x32xf32> to vector<8x8xf32>
    %c0_11 = arith.constant 0 : index
    %c1 = arith.constant 1 : index
    %c0_12 = arith.constant 0 : index
    %c0_13 = arith.constant 0 : index
    %14 = vector.load %arg5[%c0_11, %c1, %c0_12, %c0_13] : memref<1x4x8x8xf32, #tpu.memory_space<vmem>>, vector<1x1x8x8xf32>
    %15 = vector.shape_cast %14 : vector<1x1x8x8xf32> to vector<8x8xf32>
    %16 = vector.shape_cast %13 : vector<8x8xf32> to vector<1x1x8x8xf32>
    tpu.vector_store %arg5[%c0_11, %c1, %c0_12, %c0_13], %16 {strides = array<i32>} : memref<1x4x8x8xf32, #tpu.memory_space<vmem>>, vector<1x1x8x8xf32>,
    %17 = vector.extract_strided_slice %8 {offsets = [0, 16], sizes = [8, 8], strides = [1, 1]} : vector<8x32xf32> to vector<8x8xf32>
    %c0_14 = arith.constant 0 : index
    %c2 = arith.constant 2 : index
    %c0_15 = arith.constant 0 : index
    %c0_16 = arith.constant 0 : index
    %18 = vector.load %arg5[%c0_14, %c2, %c0_15, %c0_16] : memref<1x4x8x8xf32, #tpu.memory_space<vmem>>, vector<1x1x8x8xf32>
    %19 = vector.shape_cast %18 : vector<1x1x8x8xf32> to vector<8x8xf32>
    %20 = vector.shape_cast %17 : vector<8x8xf32> to vector<1x1x8x8xf32>
    tpu.vector_store %arg5[%c0_14, %c2, %c0_15, %c0_16], %20 {strides = array<i32>} : memref<1x4x8x8xf32, #tpu.memory_space<vmem>>, vector<1x1x8x8xf32>,
    %21 = vector.extract_strided_slice %8 {offsets = [0, 24], sizes = [8, 8], strides = [1, 1]} : vector<8x32xf32> to vector<8x8xf32>
    %c0_17 = arith.constant 0 : index
    %c3 = arith.constant 3 : index
    %c0_18 = arith.constant 0 : index
    %c0_19 = arith.constant 0 : index
    %22 = vector.load %arg5[%c0_17, %c3, %c0_18, %c0_19] : memref<1x4x8x8xf32, #tpu.memory_space<vmem>>, vector<1x1x8x8xf32>
    %23 = vector.shape_cast %22 : vector<1x1x8x8xf32> to vector<8x8xf32>
    %24 = vector.shape_cast %21 : vector<8x8xf32> to vector<1x1x8x8xf32>
    tpu.vector_store %arg5[%c0_17, %c3, %c0_18, %c0_19], %24 {strides = array<i32>} : memref<1x4x8x8xf32, #tpu.memory_space<vmem>>, vector<1x1x8x8xf32>,
    return
  }
  func.func @transform_0(%arg0: i32, %arg1: i32) -> (i32, i32, i32) {
    %c0_i32 = arith.constant 0 : i32
    %c0_i32_0 = arith.constant 0 : i32
    return %arg0, %arg1, %c0_i32 : i32, i32, i32
  }
  func.func @transform_1(%arg0: i32, %arg1: i32) -> (i32, i32) {
    %c0_i32 = arith.constant 0 : i32
    %c0_i32_0 = arith.constant 0 : i32
    %c0_i32_1 = arith.constant 0 : i32
    return %c0_i32, %c0_i32_0 : i32, i32
  }
  func.func @transform_2(%arg0: i32, %arg1: i32) -> (i32, i32) {
    %c0_i32 = arith.constant 0 : i32
    %c0_i32_0 = arith.constant 0 : i32
    %c0_i32_1 = arith.constant 0 : i32
    return %c0_i32, %c0_i32_0 : i32, i32
  }
  func.func @transform_3(%arg0: i32, %arg1: i32) -> (i32, i32, i32, i32) {
    %c0_i32 = arith.constant 0 : i32
    %c0_i32_0 = arith.constant 0 : i32
    %c0_i32_1 = arith.constant 0 : i32
    return %arg0, %c0_i32, %arg1, %c0_i32_0 : i32, i32, i32, i32
  }
}

</mosaic_0001>

<bundles_post_ra>
// kernel: tpu_custom_call.1
= control target key start
LH: loop header
LB: loop body
LE: loop exit
PB: predicated region body
PF: predicated region fallthrough
CT: control target
= control target key end

     0   :  { %8 = vsyncpa [#allocation3], 0  ;;  %s1058_s0 = inlined_call_operand.hbm [shape: f32[2,8,32], index: 0, kind: input, shape index: {}]   ;;  %s1059_s1 = inlined_call_operand.hbm [shape: f32[32,32], index: 1, kind: input, shape index: {}]   ;;  %s1060_s2 = inlined_call_operand.hbm [shape: f32[1,32], index: 2, kind: input, shape index: {}]   ;;  %s1061_s3 = inlined_call_operand.hbm [shape: f32[2,4,8,8], index: 3, kind: output, shape index: {}]  }
   0x1   :  { %10 = vsyncpa [#allocation3 + $0x1], 0 }
   0x2   :  { %11 = vsyncpa [#allocation6], 0 }
   0x3   :  { %12 = vsyncpa [#allocation4], 0 }
   0x4   :  { %14 = vsyncpa [#allocation4 + $0x1], 0  ;;  %s800_s12 = smov 0   ;;  %s802_s13 = smov 0  }
   0x5   :  { %s804_s14 = smov 0   ;;  %s806_s15 = smov 0  }
   0x6   :  { %s808_s16 = smov 0   ;;  %s810_s17 = smov 0  }
   0x7 LB: > { %s453_s18 = sadd.s32 4294967295, %s764_s17   ;;  %s454_s19 = sadd.s32 4294967294, %s764_s17   ;;  %s764_s17 = sphi %s810_s17, %s20_s17   ;;  %s760_s16 = sphi %s808_s16, %s1083_s16   ;;  %s756_s15 = sphi %s806_s15, %s1082_s15   ;;  %s752_s14 = sphi %s804_s14, %s1081_s14   ;;  %s748_s13 = sphi %s802_s13, %s1080_s13   ;;  %s744_s12 = sphi %s800_s12, %s1079_s12  }
   0x8   : > { %p54_p0 = scmp.ne.s32.totalorder %s748_s13, %s744_s12  ;;  %p834_p1 = scmp.eq.s32.totalorder %s453_s18, 0 }
   0x9   : > { %p838_p2 = scmp.eq.s32.totalorder %s453_s18, 1  ;;  %p128_p3 = scmp.eq.s32.totalorder %s454_s19, 1 }
   0xa   : > { %s1066_s20 = scalar_select %p834_p1, 1, 0 }
   0xb   : > { %p844_p4 = por %p834_p1, %p54_p0  ;;  %p455_p5 = scmp.ge.s32.totalorder %s764_s17, 1 }
   0xc   : > { %p849_p6 = por %p128_p3, %p54_p0  ;;  %p135_p7 = scmp.lt.s32.totalorder %s764_s17, 3 }
   0xd   : > { %s1068_s22 = scalar_select %p844_p4, 1, 0 }
   0xe   : > { %s1069_s23 = scalar_select %p849_p6, 1, 0 }
   0xf   : > { %p854_p8 = pnand %p455_p5, %p135_p7  ;;  %s766_s25 = smov [#allocation5]  }
  0x10   : > { %s147_s26 = sshll.u32 %s766_s25, 4  ;;  %s767_s28 = smov [#allocation7]   ;;  %s858_s26 = int_to_ptr.vmem [resolvable:$true] %s147_s26 }
  0x11   : > { %p511_p9 = pneg %p854_p8  ;;  %s161_s29 = sshll.u32 %s767_s28, 4  ;;  %s869_s29 = int_to_ptr.vmem [resolvable:$true] %s161_s29 }
  0x12   : > { %s592_s5 = scalar_lea.hbm %s1059_s1, 512 }
  0x13   : > { %p865_p11 = pnand %p511_p9, %p834_p1  ;;  %p593_p12 = scmp.ne.s32.totalorder %s1059_s1, %s592_s5 }
  0x14   : > { %p599_p5 = scmp.lt.u32.totalorder %s592_s5, %s1059_s1 }
  0x15   : > { %p594_p13 = pneg %p865_p11 }
  0x17   : > { %p595_p0 = pnand %p594_p13, %p593_p12 }
  0x19   : > { %p596_p3 = pneg %p595_p0 }
  0x1b   : > { %p601_p7 = pnand %p599_p5, %p596_p3 }
  0x1d   : > { %604 = shalt.err (!%p601_p7)
}
  0x1e   : > { %s605_s10 = scalar_lea.vmem %s858_s26, 512  ;;  %p613_p1 = scmp.lt.s32.totalorder %s858_s26, %s858_s26 }
  0x1f   : > { %p606_p9 = scmp.ne.s32.totalorder %s858_s26, %s605_s10  ;;  %p614_p12 = scmp.lt.s32.totalorder %s605_s10, %s605_s10 }
  0x21   : > { %p608_p10 = pnand %p606_p9, %p594_p13  ;;  %p615_p0 = por %p614_p12, %p613_p1 }
  0x23   : > { %p609_p6 = pneg %p608_p10 }
  0x25   : > { %p616_p4 = pnand %p615_p0, %p609_p6 }
  0x27   : > { %619 = shalt.err (!%p616_p4)
}
  0x28   : > { %s768_s11 = smov 128   ;;  %s769_s18 = smov 8  }
  0x29   : > { %514 = dma.hbm_to_vmem [thread:$0]  (!%p865_p11), %s1059_s1, 512, %s858_s26, [#allocation6], %s768_s11, %s768_s11, %s769_s18  }
  0x2a   : > { %s620_s4 = scalar_lea.hbm %s1060_s2, 16 }
  0x2b   : > { %p621_p1 = scmp.ne.s32.totalorder %s1060_s2, %s620_s4  ;;  %p627_p10 = scmp.lt.u32.totalorder %s620_s4, %s1060_s2 }
  0x2d   : > { %p623_p4 = pnand %p621_p1, %p594_p13 }
  0x2f   : > { %p624_p6 = pneg %p623_p4 }
  0x31   : > { %p629_p3 = pnand %p627_p10, %p624_p6 }
  0x33   : > { %632 = shalt.err (!%p629_p3)
}
  0x34   : > { %s633_s26 = scalar_lea.vmem %s869_s29, 16  ;;  %s640_s9 = scalar_lea.vmem %s869_s29, 32 }
  0x35   : > { %p634_p5 = scmp.ne.s32.totalorder %s869_s29, %s633_s26  ;;  %p641_p12 = scmp.lt.s32.totalorder %s869_s29, %s869_s29 }
  0x36   : > { %p642_p0 = scmp.lt.s32.totalorder %s640_s9, %s633_s26 }
  0x37   : > { %p636_p7 = pnand %p634_p5, %p594_p13 }
  0x38   : > { %p643_p1 = por %p642_p0, %p641_p12 }
  0x39   : > { %p637_p9 = pneg %p636_p7 }
  0x3b   : > { %p644_p4 = pnand %p643_p1, %p637_p9 }
  0x3d   : > { %647 = shalt.err (!%p644_p4)
}
  0x3e   : > { %517 = dma.hbm_to_vmem [thread:$0]  (!%p865_p11), %s1060_s2, 16, %s869_s29, [#allocation6]  }
  0x3f   : > { %s32_s18 = sadd.s32 1, %s760_s16  ;;  %s41_s19 = sadd.s32 1, %s752_s14 }
  0x40   : > { %p34_p13 = scmp.ge.s32.totalorder %s32_s18, 2  ;;  %p48_p6 = scmp.ne.s32.totalorder %s752_s14, %s748_s13 }
  0x41   : > { %p49_p10 = scmp.eq.s32.totalorder %s764_s17, 0  ;;  %p528_p3 = scmp.lt.s32.totalorder %s764_s17, 2 }
  0x42   : > { %s1085_s18 = smov (%p34_p13, %s32_s18), 0  ;;  %p934_p7 = por %p838_p2, %p48_p6 }
  0x43   : > { %p50_p5 = por %p49_p10, %p48_p6  ;;  %s36_s25 = ssub.s32 %s760_s16, %s1085_s18 }
  0x44   : > { %s1072_s27 = scalar_select %p934_p7, 1, 0 }
  0x45   : > { %s172_s28 = sand.u32 1, %s752_s14   ;;  %p39_p9 = scmp.eq.s32.totalorder %s36_s25, 0 }
  0x46   : > { %s459_s29 = sshll.u32 %s172_s28, 3  ;;  %s460_s30 = sshll.u32 %s760_s16, 7 }
  0x47   : > { %s943_s4 = scalar_select %p39_p9, %s752_s14, %s41_s19  }
  0x48   : > { %s948_s7 = scalar_lea.hbm %s1058_s0, %s460_s30  ;;  %s176_s21 = scalar_lea.vmem [#allocation2], %s459_s29 }
  0x49   : > { %s184_s8 = sshll.u32 %s176_s21, 4  ;;  %p952_p2 = pnand %p528_p3, %p50_p5  ;;  %s956_s8 = int_to_ptr.vmem [resolvable:$true] %s184_s8 }
  0x4a   : > { %s173_s9 = scalar_lea.sflag [#allocation3], %s172_s28  ;;  %s648_s10 = scalar_lea.hbm %s948_s7, 128 }
  0x4b   : > { %p649_p11 = scmp.ne.s32.totalorder %s948_s7, %s648_s10  ;;  %p650_p12 = pneg %p952_p2 }
  0x4c   : > { %s653_s25 = scalar_lea.hbm %s1058_s0, 256  ;;  %p654_p4 = scmp.lt.u32.totalorder %s948_s7, %s1058_s0 }
  0x4d   : > { %p651_p0 = pnand %p650_p12, %p649_p11  ;;  %p655_p13 = scmp.lt.u32.totalorder %s653_s25, %s648_s10 }
  0x4e   : > { %p657_p10 = scmp.lt.u32.totalorder %s648_s10, %s948_s7 }
  0x4f   : > { %p652_p1 = pneg %p651_p0  ;;  %p656_p6 = por %p655_p13, %p654_p4 }
  0x51   : > { %p658_p3 = por %p657_p10, %p656_p6 }
  0x53   : > { %p659_p5 = pnand %p658_p3, %p652_p1 }
  0x55   : > { %662 = shalt.err (!%p659_p5)
}
  0x56   : > { %s663_s28 = scalar_lea.vmem %s956_s8, 128  ;;  %s770_s5 = smov [#allocation2]  }
  0x57   : > { %p664_p9 = scmp.ne.s32.totalorder %s956_s8, %s663_s28  ;;  %s668_s6 = sshll.u32 %s770_s5, 4  ;;  %s669_s6 = int_to_ptr.vmem [resolvable:$false] %s668_s6 }
  0x58   : > { %s670_s21 = scalar_lea.vmem %s669_s6, 256  ;;  %p671_p7 = scmp.lt.s32.totalorder %s956_s8, %s669_s6 }
  0x59   : > { %p666_p11 = pnand %p664_p9, %p650_p12  ;;  %p672_p4 = scmp.lt.s32.totalorder %s670_s21, %s663_s28 }
  0x5b   : > { %p667_p0 = pneg %p666_p11  ;;  %p673_p13 = por %p672_p4, %p671_p7 }
  0x5d   : > { %p674_p6 = pnand %p673_p13, %p667_p0 }
  0x5f   : > { %677 = shalt.err (!%p674_p6)
}
  0x60   : > { %521 = dma.hbm_to_vmem [thread:$0]  (!%p952_p2), %s948_s7, 128, %s956_s8, %s173_s9  }
  0x61   : > { %193 = sbr.rel (%p854_p8) target bundleno = 469 (0x1d5), region = 32  ;;  %s986_s10 = sand.u32 (!%p854_p8), 1, %s748_s13  }
  0x62   : > { %s462_s11 = sshll.u32 (!%p854_p8), %s986_s10, 3  ;;  %s196_s19 = scalar_lea.sflag (!%p854_p8), [#allocation3], %s986_s10 }
  0x63   : > { %s199_s25 = scalar_lea.vmem (!%p854_p8), [#allocation2], %s462_s11  ;;  %p1074_p7 = scmp.ne.s32.totalorder (!%p854_p8), %s1068_s22, 0 }
  0x68   : > { %731 = dma.done.wait (%p1074_p7), %s196_s19, 128  }
  0x69   : > { %733 = vsyncadd (%p1074_p7), %s196_s19, 4294967168  ;;  %p1075_p12 = scmp.ne.s32.totalorder %s1066_s20, 0 }
  0x6b   : > { %735 = dma.done.wait (%p1075_p12), [#allocation6], 528  }
  0x6c   : > { %737 = vsyncadd (%p1075_p12), [#allocation6], 4294966768  ;;  %v771_v0 = vmov 0.0|0.0   ;;  %vm772_vm0 = vmmov 0   ;;  %v773_v1 = vmov 0.0   ;;  %v231_v2 = vld [vmem:[#allocation5] sm:$0xff] }
  0x6d   : > { %493 = vmatprep.subr.bf16.mxu0 %v771_v0  ;;  %490 = vmatprep.mubr.msk.f32.mxu0 %vm772_vm0, %v773_v1  ;;  %v232_v3 = vld [vmem:[#allocation5 + $0x8] sm:$0xff]  ;;  %v233_v4 = vld [vmem:[#allocation5 + $0x10] sm:$0xff]  ;;  %v234_v6 = vld [vmem:[#allocation5 + $0x18] sm:$0xff]  ;;  %vm242_vm1 = vcmask 261120   ;;  %s465_s20 = sshll.u32 %s986_s10, 5  ;;  %vm317_vm2 = vcmask 64512  }
  0x6e   : > { %v494_v5 = vpack.c.bf16 %v232_v3, %v231_v2  ;;  %v497_v7 = vpack.c.bf16 %v234_v6, %v233_v4  ;;  %v230_v8 = vld [vmem:[%s199_s25] sm:$0xff]  ;;  %v466_v9 = vld [vmem:[#allocation7] ss:$0 sm:$0xff]  ;;  %s774_s22 = smov 104   ;;  %s775_s24 = smov 120  }
  0x6f   : > { %s229_s7 = scalar_lea.vmem [#allocation8], %s465_s20  ;;  %s776_s8 = smov 112  }
  0x70   : > { %495 = vmatpush3.bf16.msra.mxu0 %v494_v5  ;;  %s350_s26 = sshll.u32 %s229_s7, 4  ;;  %s476_s9 = sshll.u32 %s756_s15, 9  ;;  %s1001_s26 = int_to_ptr.vmem [resolvable:$true] %s350_s26 }
  0x71   : > { %496 = vmatprep.subr.bf16.mxu0 %v771_v0  ;;  %s1008_s28 = scalar_lea.hbm %s1061_s3, %s476_s9  ;;  %s336_s15 = scalar_lea.sflag [#allocation4], %s986_s10 }
  0x72   : > { %s678_s5 = scalar_lea.vmem %s1001_s26, 512  ;;  %p1076_p2 = scmp.ne.s32.totalorder %s1072_s27, 0 }
  0x73   : > { %p679_p8 = scmp.ne.s32.totalorder %s1001_s26, %s678_s5  ;;  %s777_s6 = smov [#allocation8]  }
  0x74   : > { %498 = vmatpush3.bf16.msra.mxu0 %v497_v7  ;;  %s682_s21 = sshll.u32 %s777_s6, 4  ;;  %s683_s21 = int_to_ptr.vmem [resolvable:$false] %s682_s21 }
  0x75   : > { %p680_p1 = pnand %p679_p8, %p1076_p2  ;;  %s684_s11 = scalar_lea.vmem %s683_s21, 1024 }
  0x76   : > { %p685_p3 = scmp.lt.s32.totalorder %s1001_s26, %s683_s21  ;;  %p686_p5 = scmp.lt.s32.totalorder %s684_s11, %s678_s5 }
  0x77   : > { %491 = vmatmul.mubr.msk.f32.vlgmr.msra.gmra.mrb[0].mxu0 %vm242_vm1, %v230_v8  ;;  %p681_p10 = pneg %p680_p1 }
  0x78   : > { %p687_p9 = por %p686_p5, %p685_p3 }
  0x7a   : > { %p688_p11 = pnand %p687_p9, %p681_p10 }
 0x14a   : > { %v312_v10 = vpop.f32.mrb[0].mxu0 }
 0x14b   : > { %v313_v11 = vadd.f32 %v466_v9, %v312_v10  ;;  %v492_v12 = vpop.f32.mrb[1].mxu0 }
 0x14d   : > { %v316_v13 = vmul.f32 0.35355338, %v313_v11 }
 0x14f   : > { %330 = vrot.lane.b32.xlu1 %v316_v13, %s774_s22  ;;  %320 = vrot.lane.b32.xlu0 %v316_v13, %s775_s24  ;;  %318 = vst.msk [vmem:[%s229_s7] sm:$0xff] %vm317_vm2, %v316_v13 }
 0x153   : > { %325 = vrot.lane.b32.xlu0 %v316_v13, %s776_s8 }
 0x1c1   : > { %v331_v14 = vpop.permute.xlu1 %330  ;;  %v321_v15 = vpop.permute.xlu0 %320 }
 0x1c2   : > { %470 = vst.msk [vmem:[%s229_s7 + $0x18] sm:$0xff] %vm317_vm2, %v331_v14  ;;  %468 = vst.msk [vmem:[%s229_s7 + $0x8] sm:$0xff] %vm317_vm2, %v321_v15 }
 0x1c5   : > { %v326_v16 = vpop.permute.xlu0 %325 }
 0x1c6   : > { %469 = vst.msk [vmem:[%s229_s7 + $0x10] sm:$0xff] %vm317_vm2, %v326_v16 }
 0x1c7   : > { %691 = shalt.err (!%p688_p11)
}
 0x1c8   : > { %s692_s19 = scalar_lea.hbm %s1008_s28, 512  ;;  %s696_s22 = scalar_lea.hbm %s1061_s3, 1024 }
 0x1c9   : > { %p693_p0 = scmp.ne.s32.totalorder %s1008_s28, %s692_s19  ;;  %p697_p6 = scmp.lt.u32.totalorder %s1008_s28, %s1061_s3 }
 0x1ca   : > { %p698_p7 = scmp.lt.u32.totalorder %s696_s22, %s692_s19  ;;  %p700_p8 = scmp.lt.u32.totalorder %s692_s19, %s1008_s28 }
 0x1cb   : > { %p694_p4 = pnand %p693_p0, %p1076_p2 }
 0x1cc   : > { %p699_p12 = por %p698_p7, %p697_p6 }
 0x1cd   : > { %p695_p13 = pneg %p694_p4 }
 0x1ce   : > { %p701_p1 = por %p700_p8, %p699_p12 }
 0x1d0   : > { %p702_p10 = pnand %p701_p1, %p695_p13 }
 0x1d2   : > { %705 = shalt.err (!%p702_p10)
}
 0x1d3   : > { %s778_s8 = smov 128   ;;  %s779_s9 = smov 8  }
 0x1d4   : > { %509 = dma.vmem_to_hbm [thread:$0]  (%p1076_p2), %s1001_s26, 512, %s1008_s28, %s336_s15, %s778_s8, %s778_s8, %s779_s9  }
 0x1d5 PF: > { %s365_s29 = sand.u32 1, %s744_s12   ;;  %p1077_p3 = scmp.ne.s32.totalorder %s1069_s23, 0 }
 0x1d6   : > { %p1078_p5 = scmp.ge.s32.totalorder %s764_s17, 2  ;;  %s366_s30 = scalar_lea.sflag [#allocation4], %s365_s29 }
 0x1d8   : > { %p523_p9 = pnand %p1078_p5, %p1077_p3 }
 0x1da   : > { %739 = dma.done.wait (!%p523_p9), %s366_s30, 512  }
 0x1db   : > { %741 = vsyncadd (!%p523_p9), %s366_s30, 4294966784  ;;  %s20_s17 = sadd.s32 1, %s764_s17   ;;  %s1079_s12 = smov %s748_s13 }
 0x1dc   : > { %p17_p11 = scmp.ge.s32.totalorder %s20_s17, 4   ;;  %s1080_s13 = smov %s752_s14 }
 0x1dd   : > { %s1081_s14 = smov %s943_s4  ;;  %s1082_s15 = smov %s760_s16 }
 0x1de   : > { %s1083_s16 = smov %s1085_s18  ;;  %19 = sbr.rel (!%p17_p11) target bundleno = 7 (0x7), region = 88 }
 0x1e5   :  { %371 = vsyncpa [#allocation3], 1 }
 0x1e6   :  { %373 = vsyncpa [#allocation3 + $0x1], 1 }
 0x1e7   :  { %374 = vsyncpa [#allocation6], 1 }
 0x1e8   :  { %375 = vsyncpa [#allocation4], 1 }
 0x1e9   :  { %377 = vsyncpa [#allocation4 + $0x1], 1 }

</bundles_post_ra>
